<compile_context>
chip_gen: v7x
topology: tpu7x:2x2x1
jax: 0.10.0
libtpu: 0.0.40
codegen_flags: <defaults>
</compile_context>

<pallas_src>
import jax
import jax.numpy as jnp
from jax.experimental import pallas as pl
from jax.experimental.pallas import tpu as pltpu


def _round_up(x: int, m: int) -> int:
    return (x + m - 1) // m * m


def _vmem_capacity_bytes() -> int:
    """Physical VMEM per core, with a conservative fallback (v7x = 64 MiB/TC)."""
    try:
        info = pltpu.get_tpu_info()
        for name in ("vmem_capacity_bytes", "vmem_size_bytes", "vmem_bytes"):
            cap = getattr(info, name, None)
            if cap:
                return int(cap)
    except Exception:
        pass
    return 64 * 1024 * 1024


def _make_ffn_kernel(activation: str):
    if activation == "relu":
        act = lambda h: jnp.maximum(h, 0.0)
    elif activation == "gelu":
        act = jax.nn.gelu
    elif activation == "selu":
        act = jax.nn.selu
    else:
        raise ValueError(f"unsupported activation: {activation}")

    def kernel(x_ref, w1_ref, b1_ref, w2_ref, b2_ref, o_ref, *acc):
        # x_ref: (tm, d_in_p)   w1_ref: (d_in_p, tk)  b1_ref: (n_k, tk) [resident]
        # w2_ref: (tk, tn)      b2_ref: (1, tn)       o_ref: (tm, tn)
        # acc: optional f32 (tm, tn) scratch (only when output dtype != f32)
        k = pl.program_id(2)
        acc_ref = acc[0] if acc else o_ref  # f32 outputs accumulate in-place

        @pl.when(k == 0)
        def _init():
            acc_ref[...] = jnp.zeros_like(acc_ref)

        # First matmul chunk + bias + activation (f32 on the VPU/EUP).
        h = jnp.dot(x_ref[...], w1_ref[...], preferred_element_type=jnp.float32)
        h = act(h + b1_ref[pl.ds(k, 1), :].astype(jnp.float32))
        # dropout p=0.0 (module default) -> identity, nothing emitted.

        # Second matmul chunk, accumulate in f32.
        acc_ref[...] += jnp.dot(h.astype(w2_ref.dtype), w2_ref[...],
                                preferred_element_type=jnp.float32)

        @pl.when(k == pl.num_programs(2) - 1)
        def _finalize():
            # b2 added exactly once, at finalize.
            o_ref[...] = (acc_ref[...] + b2_ref[...].astype(jnp.float32)).astype(o_ref.dtype)

    return kernel


def position_wise_ffn(x, w1, b1, w2, b2, *, activation="relu", tm=None, tk=None,
                      compute_dtype=None, vmem_limit_bytes=None):
    """Fused Linear -> activation -> Linear.  x: [B, S, d_in] -> [B, S, d_in].

    w1: [d_in, d_ffn], b1: [d_ffn], w2: [d_ffn, d_in], b2: [d_in]
    (weights pre-transposed vs. torch.nn.Linear.weight).
    compute_dtype: e.g. jnp.bfloat16 to run the MXU in bf16 with f32 accumulation
    (recommended on v5e/v7x; fp8 weights on v7x would be a further option).
    """
    B, S, d_in = x.shape
    d_ffn = w1.shape[1]
    out_dtype = x.dtype
    M = B * S

    if compute_dtype is not None:
        x = x.astype(compute_dtype)
        w1 = w1.astype(compute_dtype)
        w2 = w2.astype(compute_dtype)
    # Biases stay f32: bias adds happen on the f32 accumulate path.
    b1 = b1.astype(jnp.float32)
    b2 = b2.astype(jnp.float32)

    in_b = jnp.dtype(x.dtype).itemsize
    w_b = jnp.dtype(w1.dtype).itemsize
    out_b = jnp.dtype(out_dtype).itemsize
    use_scratch = jnp.dtype(out_dtype) != jnp.dtype(jnp.float32)

    # ---- Lane-dense / MXU-friendly padded dims -------------------------------
    # 256-multiples fully feed the 2x256x256 MXU (v6e/v7x) when d_in is large.
    d_in_p = _round_up(d_in, 256) if d_in >= 256 else _round_up(d_in, 128)

    if tk is None:
        tk = 256                                   # reduction chunk; HBM-traffic neutral
    tk = min(_round_up(tk, 128), _round_up(d_ffn, 128))
    d_ffn_p = _round_up(d_ffn, tk)
    n_k = d_ffn_p // tk

    # ---- VMEM-aware choice of the row tile tm --------------------------------
    vmem_cap = _vmem_capacity_bytes()
    budget = (vmem_limit_bytes if vmem_limit_bytes is not None
              else min(int(vmem_cap * 0.75), 112 * 1024 * 1024))

    def vmem_needed(tm_c, tn_c):
        need = 2 * tm_c * d_in_p * in_b            # x tile (double-buffered)
        need += 2 * d_in_p * tk * w_b              # w1 chunk
        need += 2 * _round_up(n_k, 8) * tk * 4     # b1 (full, resident)
        need += 2 * tk * tn_c * w_b                # w2 chunk
        need += 2 * 8 * tn_c * 4                   # b2
        need += 2 * tm_c * tn_c * out_b            # output tile
        if use_scratch:
            need += tm_c * tn_c * 4                # f32 accumulator
        return need + (2 << 20)                    # compiler-internal slack

    if tm is None:
        tm_max = min(1024, _round_up(M, 8))
        cands = sorted({tm_max, *[c for c in (1024, 768, 512, 384, 256, 128)
                                  if c <= tm_max]}, reverse=True)
        tm = cands[-1]
        for c in cands:                            # largest tm that fits VMEM budget
            if vmem_needed(c, d_in_p) <= budget:
                tm = c
                break
    else:
        tm = min(_round_up(tm, 8), _round_up(M, 8))

    m_p = _round_up(M, tm)
    m_tiles = m_p // tm

    # With a single M tile (decode-style), split output columns in two so both
    # TensorCores on megacore parts get work (also halves per-step w2/out blocks).
    n_tiles = 2 if (m_tiles == 1 and d_in_p % 256 == 0) else 1
    tn = d_in_p // n_tiles

    # ---- Pad only when needed (skip copies for already-aligned shapes) -------
    x_flat = x.reshape(M, d_in)
    if m_p == M and d_in_p == d_in:
        x2 = x_flat
    else:
        x2 = jnp.zeros((m_p, d_in_p), x.dtype).at[:M, :d_in].set(x_flat)

    if d_in_p == d_in and d_ffn_p == d_ffn:
        w1p, w2p = w1, w2
    else:
        w1p = jnp.zeros((d_in_p, d_ffn_p), w1.dtype).at[:d_in, :d_ffn].set(w1)
        w2p = jnp.zeros((d_ffn_p, d_in_p), w2.dtype).at[:d_ffn, :d_in].set(w2)

    if d_ffn_p == d_ffn:
        b1r = b1.reshape(n_k, tk)
    else:
        b1r = jnp.zeros((d_ffn_p,), jnp.float32).at[:d_ffn].set(b1).reshape(n_k, tk)
    if d_in_p == d_in:
        b2p = b2.reshape(1, d_in)
    else:
        b2p = jnp.zeros((1, d_in_p), jnp.float32).at[0, :d_in].set(b2)
    # Padded d_ffn columns: w1 cols = 0, b1 = 0, w2 rows = 0 -> contribute 0.
    # Padded d_in rows/cols are zero / sliced off below.

    grid = (m_tiles, n_tiles, n_k)

    cost = pl.CostEstimate(
        flops=4 * M * d_in * d_ffn,
        transcendentals=0,
        bytes_accessed=int(M * d_in * (in_b + out_b)
                           + m_tiles * 2 * d_in * d_ffn * w_b
                           + (d_ffn + d_in) * 4))

    kernel = _make_ffn_kernel(activation)
    scratch = [pltpu.VMEM((tm, tn), jnp.float32)] if use_scratch else []

    out = pl.pallas_call(
        kernel,
        out_shape=jax.ShapeDtypeStruct((m_p, d_in_p), out_dtype),
        grid_spec=pltpu.PrefetchScalarGridSpec(
            num_scalar_prefetch=0,
            grid=grid,
            in_specs=[
                pl.BlockSpec((tm, d_in_p), lambda i, j, k: (i, 0)),   # x row tile
                pl.BlockSpec((d_in_p, tk), lambda i, j, k: (0, k)),   # w1 column chunk
                pl.BlockSpec((n_k, tk),    lambda i, j, k: (0, 0)),   # b1, fetched once
                pl.BlockSpec((tk, tn),     lambda i, j, k: (k, j)),   # w2 row chunk
                pl.BlockSpec((1, tn),      lambda i, j, k: (0, j)),   # b2
            ],
            out_specs=pl.BlockSpec((tm, tn), lambda i, j, k: (i, j)),
            scratch_shapes=scratch,
        ),
        compiler_params=pltpu.CompilerParams(
            dimension_semantics=("parallel", "parallel", "arbitrary"),
            vmem_limit_bytes=int(budget),
        ),
        cost_estimate=cost,
    )(x2, w1p, b1r, w2p, b2p)

    return out[:M, :d_in].reshape(B, S, d_in)
    # TODO(synk): dropout with p>0 (training mode) would need pltpu.prng_seed /
    # prng_random_bits; module default p=0.0 is the identity and is not emitted.


if __name__ == "__main__":
    def make_params(key, d_in, d_ffn, B, S):
        kx, kw1, kb1, kw2, kb2 = jax.random.split(key, 5)
        x = jax.random.normal(kx, (B, S, d_in), dtype=jnp.float32)
        w1 = jax.random.uniform(kw1, (d_in, d_ffn), jnp.float32, -1.0, 1.0) / jnp.sqrt(d_in)
        b1 = jax.random.uniform(kb1, (d_ffn,), jnp.float32, -1.0, 1.0) / jnp.sqrt(d_in)
        w2 = jax.random.uniform(kw2, (d_ffn, d_in), jnp.float32, -1.0, 1.0) / jnp.sqrt(d_ffn)
        b2 = jax.random.uniform(kb2, (d_in,), jnp.float32, -1.0, 1.0) / jnp.sqrt(d_ffn)
        return x, w1, b1, w2, b2

    def ref_ffn(x, w1, b1, w2, b2):
        return jnp.maximum(x @ w1 + b1, 0.0) @ w2 + b2

    k0, k1, k2 = jax.random.split(jax.random.PRNGKey(0), 3)

    # 1) Module-spec small shape (batch=2, seq=8, d_in=32, d_ffn=64), f32, auto tiles.
    x, w1, b1, w2, b2 = make_params(k0, 32, 64, 2, 8)
    out = jax.block_until_ready(position_wise_ffn(x, w1, b1, w2, b2))
    assert out.shape == (2, 8, 32)
    assert jnp.allclose(out, ref_ffn(x, w1, b1, w2, b2), atol=2e-5, rtol=2e-5)

    # 2) Multi M-tile + d_ffn reduction path, bf16 compute (f32 accumulate into output).
    x, w1, b1, w2, b2 = make_params(k1, 128, 512, 2, 128)
    out = jax.block_until_ready(
        position_wise_ffn(x, w1, b1, w2, b2, tm=128, tk=256,
                          compute_dtype=jnp.bfloat16))
    assert out.shape == (2, 128, 128)
    assert jnp.allclose(out, ref_ffn(x, w1, b1, w2, b2), atol=5e-2, rtol=5e-2)

    # 3) Single-M-tile decode-style shape -> exercises the 2-way output-column split.
    x, w1, b1, w2, b2 = make_params(k2, 256, 512, 1, 8)
    out = jax.block_until_ready(position_wise_ffn(x, w1, b1, w2, b2))
    assert out.shape == (1, 8, 256)
    assert jnp.allclose(out, ref_ffn(x, w1, b1, w2, b2), atol=1e-4, rtol=1e-4)

    print("KERNEL_OK")
</pallas_src>

<mosaic_0001>
module attributes {stable_mosaic.version = 11 : i64} {
  func.func @kernel(%arg0: i32, %arg1: i32, %arg2: i32, %arg3: memref<16x128xf32, #tpu.memory_space<vmem>>, %arg4: memref<128x128xf32, #tpu.memory_space<vmem>>, %arg5: memref<1x128xf32, #tpu.memory_space<vmem>>, %arg6: memref<128x128xf32, #tpu.memory_space<vmem>>, %arg7: memref<1x128xf32, #tpu.memory_space<vmem>>, %arg8: memref<16x128xf32, #tpu.memory_space<vmem>>) attributes {dimension_semantics = [#tpu.dimension_semantics<parallel>, #tpu.dimension_semantics<parallel>, #tpu.dimension_semantics<arbitrary>], iteration_bounds = array<i64: 1, 1, 1>, scalar_prefetch = 0 : i64, scratch_operands = 0 : i64, tpu.core_type = #tpu.core_type<tc>, window_params = [{transform_indices = @transform_0, window_bounds = array<i64: 16, 128>}, {transform_indices = @transform_1, window_bounds = array<i64: 128, 128>}, {pipeline_mode = #tpu.pipeline_mode<synchronous>, transform_indices = @transform_2, window_bounds = array<i64: 1, 128>}, {transform_indices = @transform_3, window_bounds = array<i64: 128, 128>}, {transform_indices = @transform_4, window_bounds = array<i64: 1, 128>}, {transform_indices = @transform_5, window_bounds = array<i64: 16, 128>}]} {
    %c0_i32 = arith.constant 0 : i32
    %0 = arith.cmpi eq, %arg2, %c0_i32 : i32
    %1 = arith.extui %0 : i1 to i32
    %c0_i32_0 = arith.constant 0 : i32
    %2 = arith.cmpi ne, %1, %c0_i32_0 : i32
    scf.if %2 {
      %cst_15 = arith.constant 0.000000e+00 : f32
      %20 = vector.broadcast %cst_15 : f32 to vector<16x128xf32>
      %c0_16 = arith.constant 0 : index
      %c0_17 = arith.constant 0 : index
      %21 = vector.load %arg8[%c0_16, %c0_17] : memref<16x128xf32, #tpu.memory_space<vmem>>, vector<16x128xf32>
      tpu.vector_store %arg8[%c0_16, %c0_17], %20 {strides = array<i32>} : memref<16x128xf32, #tpu.memory_space<vmem>>, vector<16x128xf32>,
    } else {
    }
    %c0 = arith.constant 0 : index
    %c0_1 = arith.constant 0 : index
    %3 = vector.load %arg3[%c0, %c0_1] : memref<16x128xf32, #tpu.memory_space<vmem>>, vector<16x128xf32>
    %c0_2 = arith.constant 0 : index
    %c0_3 = arith.constant 0 : index
    %4 = vector.load %arg4[%c0_2, %c0_3] : memref<128x128xf32, #tpu.memory_space<vmem>>, vector<128x128xf32>
    %cst = arith.constant dense<0.000000e+00> : vector<16x128xf32>
    %5 = tpu.matmul %3, %4, %cst {dimension_numbers = #tpu.dot_dimension_numbers<[1], [0], [0], [1], [0, 0, 1, 1], [], []>} : vector<16x128xf32>, vector<128x128xf32>, vector<16x128xf32> -> vector<16x128xf32>
    %6 = arith.index_cast %arg2 : i32 to index
    %c0_4 = arith.constant 0 : index
    %7 = vector.load %arg5[%6, %c0_4] : memref<1x128xf32, #tpu.memory_space<vmem>>, vector<1x128xf32>
    %8 = vector.broadcast %7 : vector<1x128xf32> to vector<16x128xf32>
    %9 = arith.addf %5, %8 : vector<16x128xf32>
    %cst_5 = arith.constant 0.000000e+00 : f32
    %10 = vector.broadcast %cst_5 : f32 to vector<16x128xf32>
    %11 = arith.maximumf %9, %10 : vector<16x128xf32>
    %c0_6 = arith.constant 0 : index
    %c0_7 = arith.constant 0 : index
    %12 = vector.load %arg8[%c0_6, %c0_7] : memref<16x128xf32, #tpu.memory_space<vmem>>, vector<16x128xf32>
    %c0_8 = arith.constant 0 : index
    %c0_9 = arith.constant 0 : index
    %13 = vector.load %arg6[%c0_8, %c0_9] : memref<128x128xf32, #tpu.memory_space<vmem>>, vector<128x128xf32>
    %cst_10 = arith.constant dense<0.000000e+00> : vector<16x128xf32>
    %14 = tpu.matmul %11, %13, %cst_10 {dimension_numbers = #tpu.dot_dimension_numbers<[1], [0], [0], [1], [0, 0, 1, 1], [], []>} : vector<16x128xf32>, vector<128x128xf32>, vector<16x128xf32> -> vector<16x128xf32>
    %15 = arith.addf %12, %14 : vector<16x128xf32>
    %c0_11 = arith.constant 0 : index
    %c0_12 = arith.constant 0 : index
    %16 = vector.load %arg8[%c0_11, %c0_12] : memref<16x128xf32, #tpu.memory_space<vmem>>, vector<16x128xf32>
    tpu.vector_store %arg8[%c0_11, %c0_12], %15 {strides = array<i32>} : memref<16x128xf32, #tpu.memory_space<vmem>>, vector<16x128xf32>,
    %c0_i32_13 = arith.constant 0 : i32
    %17 = arith.cmpi eq, %arg2, %c0_i32_13 : i32
    %18 = arith.extui %17 : i1 to i32
    %c0_i32_14 = arith.constant 0 : i32
    %19 = arith.cmpi ne, %18, %c0_i32_14 : i32
    scf.if %19 {
      %c0_15 = arith.constant 0 : index
      %c0_16 = arith.constant 0 : index
      %20 = vector.load %arg8[%c0_15, %c0_16] : memref<16x128xf32, #tpu.memory_space<vmem>>, vector<16x128xf32>
      %c0_17 = arith.constant 0 : index
      %c0_18 = arith.constant 0 : index
      %21 = vector.load %arg7[%c0_17, %c0_18] : memref<1x128xf32, #tpu.memory_space<vmem>>, vector<1x128xf32>
      %22 = vector.broadcast %21 : vector<1x128xf32> to vector<16x128xf32>
      %23 = arith.addf %20, %22 : vector<16x128xf32>
      %c0_19 = arith.constant 0 : index
      %c0_20 = arith.constant 0 : index
      %24 = vector.load %arg8[%c0_19, %c0_20] : memref<16x128xf32, #tpu.memory_space<vmem>>, vector<16x128xf32>
      tpu.vector_store %arg8[%c0_19, %c0_20], %23 {strides = array<i32>} : memref<16x128xf32, #tpu.memory_space<vmem>>, vector<16x128xf32>,
    } else {
    }
    return
  }
  func.func @transform_0(%arg0: i32, %arg1: i32, %arg2: i32) -> (i32, i32) {
    %c0_i32 = arith.constant 0 : i32
    %c0_i32_0 = arith.constant 0 : i32
    return %arg0, %c0_i32 : i32, i32
  }
  func.func @transform_1(%arg0: i32, %arg1: i32, %arg2: i32) -> (i32, i32) {
    %c0_i32 = arith.constant 0 : i32
    %c0_i32_0 = arith.constant 0 : i32
    return %c0_i32, %arg2 : i32, i32
  }
  func.func @transform_2(%arg0: i32, %arg1: i32, %arg2: i32) -> (i32, i32) {
    %c0_i32 = arith.constant 0 : i32
    %c0_i32_0 = arith.constant 0 : i32
    %c0_i32_1 = arith.constant 0 : i32
    return %c0_i32, %c0_i32_0 : i32, i32
  }
  func.func @transform_3(%arg0: i32, %arg1: i32, %arg2: i32) -> (i32, i32) {
    %c0_i32 = arith.constant 0 : i32
    return %arg2, %arg1 : i32, i32
  }
  func.func @transform_4(%arg0: i32, %arg1: i32, %arg2: i32) -> (i32, i32) {
    %c0_i32 = arith.constant 0 : i32
    %c0_i32_0 = arith.constant 0 : i32
    return %c0_i32, %arg1 : i32, i32
  }
  func.func @transform_5(%arg0: i32, %arg1: i32, %arg2: i32) -> (i32, i32) {
    %c0_i32 = arith.constant 0 : i32
    return %arg0, %arg1 : i32, i32
  }
}

</mosaic_0001>

<bundles_post_ra>
// kernel: tpu_custom_call.1
= control target key start
LH: loop header
LB: loop body
LE: loop exit
PB: predicated region body
PF: predicated region fallthrough
CT: control target
= control target key end

     0   :  { %10 = vsyncpa [#allocation3], 0  ;;  %s683_s0 = inlined_call_operand.hbm [shape: f32[16,128], index: 0, kind: input, shape index: {}]   ;;  %s684_s1 = inlined_call_operand.hbm [shape: f32[128,128], index: 1, kind: input, shape index: {}]   ;;  %s685_s2 = inlined_call_operand.vmem [shape: f32[1,128], index: 2, kind: input, shape index: {}]   ;;  %s686_s3 = inlined_call_operand.hbm [shape: f32[128,128], index: 3, kind: input, shape index: {}]   ;;  %s687_s4 = inlined_call_operand.vmem [shape: f32[1,128], index: 4, kind: input, shape index: {}]   ;;  %s688_s5 = inlined_call_operand.hbm [shape: f32[16,128], index: 5, kind: output, shape index: {}]  }
   0x1   :  { %11 = vsyncpa [#allocation6], 0 }
   0x2   :  { %12 = vsyncpa [#allocation4], 0  ;;  %s574_s18 = smov [#allocation5]   ;;  %s575_s20 = smov [#allocation2]  }
   0x3   :  { %s30_s19 = sshll.u32 %s574_s18, 4  ;;  %s18_s21 = sshll.u32 %s575_s20, 4  ;;  %s31_s19 = int_to_ptr.vmem [resolvable:$true] %s30_s19  ;;  %s610_s21 = int_to_ptr.vmem [resolvable:$true] %s18_s21 }
   0x4   :  { %s480_s24 = scalar_lea.hbm %s684_s1, 2048 }
   0x5   :  { %p481_p0 = scmp.ne.s32.totalorder %s684_s1, %s480_s24  ;;  %p484_p1 = scmp.lt.u32.totalorder %s480_s24, %s684_s1 }
   0x7   :  { %p486_p2 = pnand %p484_p1, %p481_p0 }
   0x9   :  { %489 = shalt.err (!%p486_p2)
}
   0xa   :  { %s490_s29 = scalar_lea.vmem %s31_s19, 2048  ;;  %p495_p4 = scmp.lt.s32.totalorder %s31_s19, %s31_s19 }
   0xb   :  { %p491_p3 = scmp.ne.s32.totalorder %s31_s19, %s490_s29  ;;  %p496_p5 = scmp.lt.s32.totalorder %s490_s29, %s490_s29 }
   0xd   :  { %p497_p6 = por %p496_p5, %p495_p4 }
   0xf   :  { %p498_p7 = pnand %p497_p6, %p491_p3 }
  0x11   :  { %501 = shalt.err (!%p498_p7)
}
  0x12   :  { %s576_s30 = smov 128   ;;  %s577_s6 = smov 8  }
  0x13   :  { %36 = dma.hbm_to_vmem [thread:$0]  %s684_s1, 2048, %s31_s19, [#allocation6], %s576_s30, %s576_s30, %s577_s6  }
  0x14   :  { %s502_s11 = scalar_lea.hbm %s683_s0, 256 }
  0x15   :  { %p503_p8 = scmp.ne.s32.totalorder %s683_s0, %s502_s11  ;;  %p506_p9 = scmp.lt.u32.totalorder %s502_s11, %s683_s0 }
  0x17   :  { %p508_p10 = pnand %p506_p9, %p503_p8 }
  0x19   :  { %511 = shalt.err (!%p508_p10)
}
  0x1a   :  { %s512_s16 = scalar_lea.vmem %s610_s21, 256  ;;  %p517_p12 = scmp.lt.s32.totalorder %s610_s21, %s610_s21 }
  0x1b   :  { %p513_p11 = scmp.ne.s32.totalorder %s610_s21, %s512_s16  ;;  %p518_p13 = scmp.lt.s32.totalorder %s512_s16, %s512_s16 }
  0x1d   :  { %p519_p0 = por %p518_p13, %p517_p12 }
  0x1f   :  { %p520_p1 = pnand %p519_p0, %p513_p11 }
  0x21   :  { %523 = shalt.err (!%p520_p1)
}
  0x22   :  { %24 = dma.hbm_to_vmem [thread:$0]  %s683_s0, 256, %s610_s21, [#allocation3], %s576_s30, %s576_s30, %s577_s6  }
  0x23   :  { %s578_s18 = smov [#allocation7]   ;;  %s524_s23 = scalar_lea.hbm %s686_s3, 2048 }
  0x24   :  { %s44_s19 = sshll.u32 %s578_s18, 4  ;;  %p525_p2 = scmp.ne.s32.totalorder %s686_s3, %s524_s23  ;;  %s45_s19 = int_to_ptr.vmem [resolvable:$true] %s44_s19 }
  0x25   :  { %p528_p3 = scmp.lt.u32.totalorder %s524_s23, %s686_s3 }
  0x27   :  { %p530_p4 = pnand %p528_p3, %p525_p2 }
  0x29   :  { %533 = shalt.err (!%p530_p4)
}
  0x2a   :  { %s534_s28 = scalar_lea.vmem %s45_s19, 2048  ;;  %p539_p6 = scmp.lt.s32.totalorder %s45_s19, %s45_s19 }
  0x2b   :  { %p535_p5 = scmp.ne.s32.totalorder %s45_s19, %s534_s28  ;;  %p540_p7 = scmp.lt.s32.totalorder %s534_s28, %s534_s28 }
  0x2d   :  { %p541_p8 = por %p540_p7, %p539_p6 }
  0x2f   :  { %p542_p9 = pnand %p541_p8, %p535_p5 }
  0x31   :  { %545 = shalt.err (!%p542_p9)
}
  0x32   :  { %50 = dma.hbm_to_vmem [thread:$0]  %s686_s3, 2048, %s45_s19, [#allocation6], %s576_s30, %s576_s30, %s577_s6  }
  0x33   :  { %568 = dma.done.wait [#allocation3], 256  }
  0x34   :  { %569 = vsyncadd [#allocation3], 4294967040 }
  0x35   :  { %570 = dma.done.wait [#allocation6], 4096  }
  0x36   :  { %571 = vsyncadd [#allocation6], 4294963200  ;;  %v70_v0 = vld [vmem:[#allocation5] sm:$0xff]  ;;  %v71_v1 = vld [vmem:[#allocation5 + $0x8] sm:$0xff]  ;;  %s579_s9 = smov [#allocation8]  }
  0x37   :  { %v72_v2 = vld [vmem:[#allocation5 + $0x10] sm:$0xff]  ;;  %v409_v3 = vpack.c.bf16 %v71_v1, %v70_v0  ;;  %v73_v4 = vld [vmem:[#allocation5 + $0x18] sm:$0xff]  ;;  %v74_v6 = vld [vmem:[#allocation5 + $0x20] sm:$0xff]  ;;  %s288_s10 = sshll.u32 %s579_s9, 4  ;;  %s289_s10 = int_to_ptr.vmem [resolvable:$true] %s288_s10 }
  0x38   :  { %v413_v5 = vpack.c.bf16 %v73_v4, %v72_v2  ;;  %v75_v7 = vld [vmem:[#allocation5 + $0x28] sm:$0xff]  ;;  %v76_v9 = vld [vmem:[#allocation5 + $0x30] sm:$0xff]  ;;  %v77_v10 = vld [vmem:[#allocation5 + $0x38] sm:$0xff]  ;;  %p551_p11 = scmp.lt.s32.totalorder %s289_s10, %s289_s10 }
  0x39   :  { %410 = vmatprep.subr.bf16.mxu0 %v409_v3  ;;  %v417_v8 = vpack.c.bf16 %v75_v7, %v74_v6  ;;  %v68_v11 = vld [vmem:[#allocation2] sm:$0xff]  ;;  %v172_v12 = vld [vmem:[#allocation7] sm:$0xff]  ;;  %v173_v13 = vld [vmem:[#allocation7 + $0x8] sm:$0xff]  ;;  %v421_v20 = vpack.c.bf16 %v77_v10, %v76_v9 }
  0x3a   :  { %412 = vmatpush3.bf16.msra.mxu0 %v409_v3  ;;  %371 = vmatprep.mubr.f32.mxu0 %v68_v11  ;;  %v174_v14 = vld [vmem:[#allocation7 + $0x10] sm:$0xff]  ;;  %v441_v15 = vpack.c.bf16 %v173_v13, %v172_v12  ;;  %v175_v16 = vld [vmem:[#allocation7 + $0x18] sm:$0xff]  ;;  %v176_v18 = vld [vmem:[#allocation7 + $0x20] sm:$0xff] }
  0x3b   :  { %414 = vmatprep.subr.bf16.mxu0 %v413_v5  ;;  %v445_v17 = vpack.c.bf16 %v175_v16, %v174_v14  ;;  %v177_v19 = vld [vmem:[#allocation7 + $0x28] sm:$0xff]  ;;  %v78_v21 = vld [vmem:[#allocation5 + $0x40] sm:$0xff]  ;;  %v178_v24 = vld [vmem:[#allocation7 + $0x30] sm:$0xff] }
  0x3c   :  { %442 = vmatprep.subr.bf16.mxu1 %v441_v15  ;;  %v79_v22 = vld [vmem:[#allocation5 + $0x48] sm:$0xff]  ;;  %v449_v23 = vpack.c.bf16 %v177_v19, %v176_v18  ;;  %v179_v25 = vld [vmem:[#allocation7 + $0x38] sm:$0xff]  ;;  %v80_v27 = vld [vmem:[#allocation5 + $0x50] sm:$0xff] }
  0x3d   :  { %444 = vmatpush3.bf16.msra.mxu1 %v441_v15  ;;  %v425_v26 = vpack.c.bf16 %v79_v22, %v78_v21  ;;  %v81_v28 = vld [vmem:[#allocation5 + $0x58] sm:$0xff]  ;;  %v453_v29 = vpack.c.bf16 %v179_v25, %v178_v24  ;;  %v180_v30 = vld [vmem:[#allocation7 + $0x40] sm:$0xff]  ;;  %v181_v31 = vld [vmem:[#allocation7 + $0x48] sm:$0xff] }
  0x3e   :  { %416 = vmatpush3.bf16.msra.mxu0 %v413_v5  ;;  %446 = vmatprep.subr.bf16.mxu1 %v445_v17  ;;  %v429_v32 = vpack.c.bf16 %v81_v28, %v80_v27  ;;  %v82_v33 = vld [vmem:[#allocation5 + $0x60] sm:$0xff]  ;;  %v83_v34 = vld [vmem:[#allocation5 + $0x68] sm:$0xff]  ;;  %v457_v35 = vpack.c.bf16 %v181_v31, %v180_v30  ;;  %v182_v36 = vld [vmem:[#allocation7 + $0x50] sm:$0xff] }
  0x3f   :  { %418 = vmatprep.subr.bf16.mxu0 %v417_v8  ;;  %v183_v37 = vld [vmem:[#allocation7 + $0x58] sm:$0xff]  ;;  %v433_v38 = vpack.c.bf16 %v83_v34, %v82_v33  ;;  %v84_v39 = vld [vmem:[#allocation5 + $0x70] sm:$0xff]  ;;  %v184_v42 = vld [vmem:[#allocation7 + $0x60] sm:$0xff] }
  0x40   :  { %v85_v40 = vld [vmem:[#allocation5 + $0x78] sm:$0xff]  ;;  %v461_v41 = vpack.c.bf16 %v183_v37, %v182_v36  ;;  %v185_v43 = vld [vmem:[#allocation7 + $0x68] sm:$0xff]  ;;  %v186_v47 = vld [vmem:[#allocation7 + $0x70] sm:$0xff] }
  0x41   :  { %448 = vmatpush3.bf16.msra.mxu1 %v445_v17  ;;  %v437_v44 = vpack.c.bf16 %v85_v40, %v84_v39  ;;  %v465_v45 = vpack.c.bf16 %v185_v43, %v184_v42  ;;  %v69_v46 = vld [vmem:[#allocation2 + $0x8] sm:$0xff]  ;;  %v301_v50 = vld [vmem:[%s685_s2] ss:$0 sm:$0xff]  ;;  %s546_s2 = scalar_lea.vmem %s289_s10, 256 }
  0x42   :  { %420 = vmatpush3.bf16.msra.mxu0 %v417_v8  ;;  %450 = vmatprep.subr.bf16.mxu1 %v449_v23  ;;  %v187_v48 = vld [vmem:[#allocation7 + $0x78] sm:$0xff]  ;;  %v302_v58 = vld [vmem:[%s687_s4] ss:$0 sm:$0xff]  ;;  %p547_p10 = scmp.ne.s32.totalorder %s289_s10, %s546_s2  ;;  %p552_p12 = scmp.lt.s32.totalorder %s546_s2, %s546_s2 }
  0x43   :  { %422 = vmatprep.subr.bf16.mxu0 %v421_v20  ;;  %v469_v49 = vpack.c.bf16 %v187_v48, %v186_v47 }
  0x44   :  { %p553_p13 = por %p552_p12, %p551_p11 }
  0x45   :  { %452 = vmatpush3.bf16.msra.mxu1 %v449_v23 }
  0x46   :  { %424 = vmatpush3.bf16.msra.mxu0 %v421_v20  ;;  %454 = vmatprep.subr.bf16.mxu1 %v453_v29  ;;  %p554_p0 = pnand %p553_p13, %p547_p10 }
  0x47   :  { %426 = vmatprep.subr.bf16.mxu0 %v425_v26 }
  0x49   :  { %456 = vmatpush3.bf16.msra.mxu1 %v453_v29 }
  0x4a   :  { %428 = vmatpush3.bf16.msra.mxu0 %v425_v26  ;;  %458 = vmatprep.subr.bf16.mxu1 %v457_v35 }
  0x4b   :  { %430 = vmatprep.subr.bf16.mxu0 %v429_v32 }
  0x4d   :  { %460 = vmatpush3.bf16.msra.mxu1 %v457_v35 }
  0x4e   :  { %432 = vmatpush3.bf16.msra.mxu0 %v429_v32  ;;  %462 = vmatprep.subr.bf16.mxu1 %v461_v41 }
  0x4f   :  { %434 = vmatprep.subr.bf16.mxu0 %v433_v38 }
  0x51   :  { %464 = vmatpush3.bf16.msra.mxu1 %v461_v41 }
  0x52   :  { %436 = vmatpush3.bf16.msra.mxu0 %v433_v38  ;;  %466 = vmatprep.subr.bf16.mxu1 %v465_v45 }
  0x53   :  { %438 = vmatprep.subr.bf16.mxu0 %v437_v44 }
  0x55   :  { %468 = vmatpush3.bf16.msra.mxu1 %v465_v45 }
  0x56   :  { %440 = vmatpush3.bf16.msra.mxu0 %v437_v44  ;;  %470 = vmatprep.subr.bf16.mxu1 %v469_v49 }
  0x59   :  { %372 = vmatmul.mubr.f32.vlgmr.msra.gmra.mrb[0].mxu0 %v69_v46  ;;  %472 = vmatpush3.bf16.msra.mxu1 %v469_v49 }
 0x12c   :  { %v373_v51 = vpop.f32.mrb[0].mxu0 }
 0x12d   :  { %v165_v52 = vadd.f32 %v373_v51, %v301_v50  ;;  %v159_v53 = vpop.f32.mrb[1].mxu0 }
 0x12e   :  { %v160_v54 = vadd.f32 %v301_v50, %v159_v53 }
 0x12f   :  { %v169_v56 = vmax.f32 %v165_v52, 0.0 }
 0x130   :  { %v168_v55 = vmax.f32 %v160_v54, 0.0 }
 0x132   :  { %406 = vmatprep.mubr.f32.mxu1 %v168_v55 }
 0x133   :  { %407 = vmatmul.mubr.f32.vlgmr.msra.gmra.mrb[0].mxu1 %v169_v56 }
 0x206   :  { %v408_v57 = vpop.f32.mrb[0].mxu1 }
 0x207   :  { %v254_v59 = vpop.f32.mrb[1].mxu1  ;;  %v280_v60 = vadd.f32 %v408_v57, %v302_v58 }
 0x208   :  { %v279_v61 = vadd.f32 %v302_v58, %v254_v59 }
 0x209   :  { %282 = vst [vmem:[#allocation8 + $0x8] sm:$0xff] %v280_v60 }
 0x20a   :  { %281 = vst [vmem:[#allocation8] sm:$0xff] %v279_v61 }
 0x20b   :  { %557 = shalt.err (!%p554_p0)
}
 0x20c   :  { %s558_s13 = scalar_lea.hbm %s688_s5, 256 }
 0x20d   :  { %p559_p1 = scmp.ne.s32.totalorder %s688_s5, %s558_s13  ;;  %p562_p2 = scmp.lt.u32.totalorder %s558_s13, %s688_s5 }
 0x20f   :  { %p564_p3 = pnand %p562_p2, %p559_p1 }
 0x211   :  { %567 = shalt.err (!%p564_p3)
}
 0x212   :  { %294 = dma.vmem_to_hbm [thread:$0]  %s289_s10, 256, %s688_s5, [#allocation4], %s576_s30, %s576_s30, %s577_s6  }
 0x213   :  { %572 = dma.done.wait [#allocation4], 256  }
 0x214   :  { %573 = vsyncadd [#allocation4], 4294967040 }
 0x215   :  { %298 = vsyncpa [#allocation3], 1 }
 0x216   :  { %299 = vsyncpa [#allocation6], 1 }
 0x217   :  { %300 = vsyncpa [#allocation4], 1 }

</bundles_post_ra>
